<compile_context>
chip_gen: v7x
topology: tpu7x:2x2x1
jax: 0.10.0
libtpu: 0.0.40
codegen_flags: <defaults>
</compile_context>

<pallas_src>
import functools

import jax
import jax.numpy as jnp
from jax.experimental import pallas as pl
from jax.experimental.pallas import tpu as pltpu


_LANE = 128       # vreg lane width: feature dims padded to a multiple of this
_SUBLANE = 8      # sublane granularity: batch tile must be a multiple of this
_MAX_BATCH_TILE = 512


def _round_up(x, m):
    return (x + m - 1) // m * m


def _make_fused_mlp_kernel(num_layers):
    """Kernel: refs = (x, w0, b0, w1, b1, ..., out). All feature dims lane-padded."""

    def kernel(x_ref, *refs):
        out_ref = refs[-1]
        wb_refs = refs[:-1]
        h = x_ref[...]                                    # (TB, D0p) f32
        for l in range(num_layers):
            w = wb_refs[2 * l][...]                       # (Dlp, Dl1p)
            b = wb_refs[2 * l + 1][...]                   # (1, Dl1p)
            y = jnp.dot(h, w, preferred_element_type=jnp.float32) + b
            h = jnp.where(y >= 0, y, 0.2 * y)             # LeakyReLU(0.2)
        out_ref[...] = h.astype(out_ref.dtype)

    return kernel


@functools.partial(jax.jit, static_argnames=("batch_tile",))
def attribute_encoder_forward(raw_attr, params, *, batch_tile=_MAX_BATCH_TILE):
    """Fused MLP forward: leaky_relu(...leaky_relu(x @ W0 + b0)... @ Wn + bn)."""
    # matches: raw_attr.clone().detach().float()
    x = raw_attr.astype(jnp.float32)
    B, K = x.shape
    num_layers = len(params)
    dims = [K] + [w.shape[1] for (w, _) in params]
    pdims = [_round_up(d, _LANE) for d in dims]           # lane-dense feature dims

    # Batch tiling: multiple of 8 sublanes, capped so tiles stay small in VMEM.
    tb = min(_round_up(B, _SUBLANE), _round_up(batch_tile, _SUBLANE))
    Bp = _round_up(B, tb)
    grid = (Bp // tb,)

    # Zero-pad input and parameters (exact — padded lanes stay 0 everywhere).
    xp = jnp.zeros((Bp, pdims[0]), jnp.float32).at[:B, :K].set(x)
    padded_wb = []
    for l, (w, b) in enumerate(params):
        wp = (jnp.zeros((pdims[l], pdims[l + 1]), jnp.float32)
              .at[: dims[l], : dims[l + 1]].set(w.astype(jnp.float32)))
        bp = (jnp.zeros((1, pdims[l + 1]), jnp.float32)
              .at[:, : dims[l + 1]].set(b.astype(jnp.float32).reshape(1, -1)))
        padded_wb.extend([wp, bp])

    # BlockSpecs: activations tiled over batch; weights/biases resident (const idx).
    in_specs = [pl.BlockSpec((tb, pdims[0]), lambda i: (i, 0))]
    for l in range(num_layers):
        in_specs.append(pl.BlockSpec((pdims[l], pdims[l + 1]), lambda i: (0, 0)))
        in_specs.append(pl.BlockSpec((1, pdims[l + 1]), lambda i: (0, 0)))
    out_specs = pl.BlockSpec((tb, pdims[-1]), lambda i: (i, 0))

    # VMEM budget: double-buffered activation tiles + resident weights + headroom.
    f32 = 4
    act_bytes = (tb * pdims[0] + tb * pdims[-1]) * f32
    wb_bytes = sum(pdims[l] * pdims[l + 1] + pdims[l + 1]
                   for l in range(num_layers)) * f32
    vmem_limit = min(2 * (act_bytes + wb_bytes) + (4 << 20), 32 << 20)

    # Advisory cost estimate so XLA schedules this tiny call sensibly.
    flops = sum(2 * Bp * pdims[l] * pdims[l + 1] + 2 * Bp * pdims[l + 1]
                for l in range(num_layers))
    bytes_accessed = (Bp * pdims[0] + Bp * pdims[-1]) * f32 + wb_bytes
    cost = pl.CostEstimate(flops=flops, transcendentals=0,
                           bytes_accessed=bytes_accessed)

    out_padded = pl.pallas_call(
        _make_fused_mlp_kernel(num_layers),
        out_shape=jax.ShapeDtypeStruct((Bp, pdims[-1]), jnp.float32),
        grid=grid,
        in_specs=in_specs,
        out_specs=out_specs,
        compiler_params=pltpu.CompilerParams(
            dimension_semantics=("parallel",),
            vmem_limit_bytes=vmem_limit,
        ),
        cost_estimate=cost,
    )(xp, *padded_wb)

    return out_padded[:B, : dims[-1]]


def make_params(key, n_raw_attrs, hidden_units):
    """Deterministic synthetic parameters (same init ranges as nn.Linear).

    PyTorch nn.Linear(i, o) has weight [o, i] and bias [o]; we keep the
    mathematically equivalent transposed layout W: [i, o], b: [1, o].
    """
    dims = [n_raw_attrs] + list(hidden_units)
    params = []
    for i in range(len(dims) - 1):
        key, kw, kb = jax.random.split(key, 3)
        bound = 1.0 / float(dims[i]) ** 0.5
        w = jax.random.uniform(kw, (dims[i], dims[i + 1]),
                               minval=-bound, maxval=bound, dtype=jnp.float32)
        b = jax.random.uniform(kb, (1, dims[i + 1]),
                               minval=-bound, maxval=bound, dtype=jnp.float32)
        params.append((w, b))
    return params


def _reference_forward(raw_attr, params):
    x = raw_attr.astype(jnp.float32)
    for w, b in params:
        y = x @ w + b
        x = jnp.where(y >= 0, y, 0.2 * y)
    return x


if __name__ == "__main__":
    key = jax.random.PRNGKey(0)

    batch = 8
    n_raw_attrs = 16
    hidden_units = [32, 16]

    key, kx, kp = jax.random.split(key, 3)
    raw_attr = jax.random.normal(kx, (batch, n_raw_attrs), dtype=jnp.float32)
    params = make_params(kp, n_raw_attrs, hidden_units)

    out = attribute_encoder_forward(raw_attr, params)
    out = jax.block_until_ready(out)

    ref = _reference_forward(raw_attr, params)
    assert out.shape == (batch, hidden_units[-1]), out.shape
    assert jnp.allclose(out, ref, atol=1e-5, rtol=1e-5)

    print("KERNEL_OK")
</pallas_src>

<mosaic_0001>
module attributes {stable_mosaic.version = 11 : i64} {
  func.func @kernel(%arg0: i32, %arg1: memref<8x128xf32, #tpu.memory_space<vmem>>, %arg2: memref<128x128xf32, #tpu.memory_space<vmem>>, %arg3: memref<1x128xf32, #tpu.memory_space<vmem>>, %arg4: memref<128x128xf32, #tpu.memory_space<vmem>>, %arg5: memref<1x128xf32, #tpu.memory_space<vmem>>, %arg6: memref<8x128xf32, #tpu.memory_space<vmem>>) attributes {dimension_semantics = [#tpu.dimension_semantics<parallel>], iteration_bounds = array<i64: 1>, scalar_prefetch = 0 : i64, scratch_operands = 0 : i64, tpu.core_type = #tpu.core_type<tc>, window_params = [{transform_indices = @transform_0, window_bounds = array<i64: 8, 128>}, {pipeline_mode = #tpu.pipeline_mode<synchronous>, transform_indices = @transform_1, window_bounds = array<i64: 128, 128>}, {pipeline_mode = #tpu.pipeline_mode<synchronous>, transform_indices = @transform_2, window_bounds = array<i64: 1, 128>}, {pipeline_mode = #tpu.pipeline_mode<synchronous>, transform_indices = @transform_3, window_bounds = array<i64: 128, 128>}, {pipeline_mode = #tpu.pipeline_mode<synchronous>, transform_indices = @transform_4, window_bounds = array<i64: 1, 128>}, {transform_indices = @transform_5, window_bounds = array<i64: 8, 128>}]} {
    %c0 = arith.constant 0 : index
    %c0_0 = arith.constant 0 : index
    %0 = vector.load %arg1[%c0, %c0_0] : memref<8x128xf32, #tpu.memory_space<vmem>>, vector<8x128xf32>
    %c0_1 = arith.constant 0 : index
    %c0_2 = arith.constant 0 : index
    %1 = vector.load %arg2[%c0_1, %c0_2] : memref<128x128xf32, #tpu.memory_space<vmem>>, vector<128x128xf32>
    %c0_3 = arith.constant 0 : index
    %c0_4 = arith.constant 0 : index
    %2 = vector.load %arg3[%c0_3, %c0_4] : memref<1x128xf32, #tpu.memory_space<vmem>>, vector<1x128xf32>
    %cst = arith.constant dense<0.000000e+00> : vector<8x128xf32>
    %3 = tpu.matmul %0, %1, %cst {dimension_numbers = #tpu.dot_dimension_numbers<[1], [0], [0], [1], [0, 0, 1, 1], [], []>} : vector<8x128xf32>, vector<128x128xf32>, vector<8x128xf32> -> vector<8x128xf32>
    %4 = vector.broadcast %2 : vector<1x128xf32> to vector<8x128xf32>
    %5 = arith.addf %3, %4 : vector<8x128xf32>
    %cst_5 = arith.constant 0.000000e+00 : f32
    %6 = vector.broadcast %cst_5 : f32 to vector<8x128xf32>
    %7 = arith.cmpf oge, %5, %6 : vector<8x128xf32>
    %cst_6 = arith.constant 2.000000e-01 : f32
    %8 = vector.broadcast %cst_6 : f32 to vector<8x128xf32>
    %9 = arith.mulf %8, %5 : vector<8x128xf32>
    %10 = arith.select %7, %5, %9 : vector<8x128xi1>, vector<8x128xf32>
    %c0_7 = arith.constant 0 : index
    %c0_8 = arith.constant 0 : index
    %11 = vector.load %arg4[%c0_7, %c0_8] : memref<128x128xf32, #tpu.memory_space<vmem>>, vector<128x128xf32>
    %c0_9 = arith.constant 0 : index
    %c0_10 = arith.constant 0 : index
    %12 = vector.load %arg5[%c0_9, %c0_10] : memref<1x128xf32, #tpu.memory_space<vmem>>, vector<1x128xf32>
    %cst_11 = arith.constant dense<0.000000e+00> : vector<8x128xf32>
    %13 = tpu.matmul %10, %11, %cst_11 {dimension_numbers = #tpu.dot_dimension_numbers<[1], [0], [0], [1], [0, 0, 1, 1], [], []>} : vector<8x128xf32>, vector<128x128xf32>, vector<8x128xf32> -> vector<8x128xf32>
    %14 = vector.broadcast %12 : vector<1x128xf32> to vector<8x128xf32>
    %15 = arith.addf %13, %14 : vector<8x128xf32>
    %cst_12 = arith.constant 0.000000e+00 : f32
    %16 = vector.broadcast %cst_12 : f32 to vector<8x128xf32>
    %17 = arith.cmpf oge, %15, %16 : vector<8x128xf32>
    %cst_13 = arith.constant 2.000000e-01 : f32
    %18 = vector.broadcast %cst_13 : f32 to vector<8x128xf32>
    %19 = arith.mulf %18, %15 : vector<8x128xf32>
    %20 = arith.select %17, %15, %19 : vector<8x128xi1>, vector<8x128xf32>
    %c0_14 = arith.constant 0 : index
    %c0_15 = arith.constant 0 : index
    %21 = vector.load %arg6[%c0_14, %c0_15] : memref<8x128xf32, #tpu.memory_space<vmem>>, vector<8x128xf32>
    tpu.vector_store %arg6[%c0_14, %c0_15], %20 {strides = array<i32>} : memref<8x128xf32, #tpu.memory_space<vmem>>, vector<8x128xf32>,
    return
  }
  func.func @transform_0(%arg0: i32) -> (i32, i32) {
    %c0_i32 = arith.constant 0 : i32
    %c0_i32_0 = arith.constant 0 : i32
    return %arg0, %c0_i32 : i32, i32
  }
  func.func @transform_1(%arg0: i32) -> (i32, i32) {
    %c0_i32 = arith.constant 0 : i32
    %c0_i32_0 = arith.constant 0 : i32
    %c0_i32_1 = arith.constant 0 : i32
    return %c0_i32, %c0_i32_0 : i32, i32
  }
  func.func @transform_2(%arg0: i32) -> (i32, i32) {
    %c0_i32 = arith.constant 0 : i32
    %c0_i32_0 = arith.constant 0 : i32
    %c0_i32_1 = arith.constant 0 : i32
    return %c0_i32, %c0_i32_0 : i32, i32
  }
  func.func @transform_3(%arg0: i32) -> (i32, i32) {
    %c0_i32 = arith.constant 0 : i32
    %c0_i32_0 = arith.constant 0 : i32
    %c0_i32_1 = arith.constant 0 : i32
    return %c0_i32, %c0_i32_0 : i32, i32
  }
  func.func @transform_4(%arg0: i32) -> (i32, i32) {
    %c0_i32 = arith.constant 0 : i32
    %c0_i32_0 = arith.constant 0 : i32
    %c0_i32_1 = arith.constant 0 : i32
    return %c0_i32, %c0_i32_0 : i32, i32
  }
  func.func @transform_5(%arg0: i32) -> (i32, i32) {
    %c0_i32 = arith.constant 0 : i32
    %c0_i32_0 = arith.constant 0 : i32
    return %arg0, %c0_i32 : i32, i32
  }
}

</mosaic_0001>

<bundles_post_ra>
// kernel: attribute_encoder_forward.1
= control target key start
LH: loop header
LB: loop body
LE: loop exit
PB: predicated region body
PF: predicated region fallthrough
CT: control target
= control target key end

     0   :  { %v411_v3 = vmov 0.0|0.0   ;;  %vm412_vm0 = vmmov 0   ;;  %v413_v6 = vmov 0.0   ;;  %s578_s0 = inlined_call_operand.vmem [shape: f32[8,128], index: 0, kind: input, shape index: {}]   ;;  %s579_s1 = inlined_call_operand.vmem [shape: f32[128,128], index: 1, kind: input, shape index: {}]   ;;  %s580_s2 = inlined_call_operand.vmem [shape: f32[1,128], index: 2, kind: input, shape index: {}]   ;;  %s581_s3 = inlined_call_operand.vmem [shape: f32[128,128], index: 3, kind: input, shape index: {}]   ;;  %s582_s4 = inlined_call_operand.vmem [shape: f32[1,128], index: 4, kind: input, shape index: {}]   ;;  %s583_s5 = inlined_call_operand.hbm [shape: f32[8,128], index: 5, kind: output, shape index: {}]  }
   0x1   :  { %v22_v0 = vld [vmem:[%s579_s1] sm:$0xff]  ;;  %v23_v1 = vld [vmem:[%s579_s1 + $0x8] sm:$0xff]  ;;  %v24_v2 = vld [vmem:[%s579_s1 + $0x10] sm:$0xff]  ;;  %335 = vmatprep.subr.bf16.mxu0 %v411_v3  ;;  %297 = vmatprep.mubr.msk.f32.mxu0 %vm412_vm0, %v413_v6 }
   0x2   :  { %v336_v4 = vpack.c.bf16 %v23_v1, %v22_v0  ;;  %v25_v5 = vld [vmem:[%s579_s1 + $0x18] sm:$0xff]  ;;  %359 = vmatprep.subr.bf16.mxu1 %v411_v3  ;;  %332 = vmatprep.mubr.msk.f32.mxu1 %vm412_vm0, %v413_v6  ;;  %v26_v8 = vld [vmem:[%s579_s1 + $0x20] sm:$0xff]  ;;  %v27_v9 = vld [vmem:[%s579_s1 + $0x28] sm:$0xff] }
   0x3   :  { %v339_v7 = vpack.c.bf16 %v25_v5, %v24_v2  ;;  %v118_v10 = vld [vmem:[%s581_s3] sm:$0xff]  ;;  %v119_v11 = vld [vmem:[%s581_s3 + $0x8] sm:$0xff]  ;;  %v120_v12 = vld [vmem:[%s581_s3 + $0x10] sm:$0xff]  ;;  %v342_v14 = vpack.c.bf16 %v27_v9, %v26_v8 }
   0x4   :  { %337 = vmatpush3.bf16.msra.mxu0 %v336_v4  ;;  %v121_v13 = vld [vmem:[%s581_s3 + $0x18] sm:$0xff]  ;;  %v360_v15 = vpack.c.bf16 %v119_v11, %v118_v10  ;;  %v28_v16 = vld [vmem:[%s579_s1 + $0x30] sm:$0xff]  ;;  %v122_v19 = vld [vmem:[%s581_s3 + $0x20] sm:$0xff] }
   0x5   :  { %338 = vmatprep.subr.bf16.mxu0 %v411_v3  ;;  %v29_v17 = vld [vmem:[%s579_s1 + $0x38] sm:$0xff]  ;;  %v363_v18 = vpack.c.bf16 %v121_v13, %v120_v12  ;;  %v123_v20 = vld [vmem:[%s581_s3 + $0x28] sm:$0xff] }
   0x6   :  { %361 = vmatpush3.bf16.msra.mxu1 %v360_v15 }
   0x7   :  { %362 = vmatprep.subr.bf16.mxu1 %v411_v3 }
   0x8   :  { %340 = vmatpush3.bf16.msra.mxu0 %v339_v7 }
   0x9   :  { %341 = vmatprep.subr.bf16.mxu0 %v411_v3 }
   0xa   :  { %10 = vsyncpa [#allocation3], 0  ;;  %v345_v21 = vpack.c.bf16 %v29_v17, %v28_v16  ;;  %v30_v22 = vld [vmem:[%s579_s1 + $0x40] sm:$0xff]  ;;  %v31_v23 = vld [vmem:[%s579_s1 + $0x48] sm:$0xff]  ;;  %364 = vmatpush3.bf16.msra.mxu1 %v363_v18  ;;  %v366_v24 = vpack.c.bf16 %v123_v20, %v122_v19 }
   0xb   :  { %365 = vmatprep.subr.bf16.mxu1 %v411_v3  ;;  %v124_v25 = vld [vmem:[%s581_s3 + $0x30] sm:$0xff]  ;;  %v125_v26 = vld [vmem:[%s581_s3 + $0x38] sm:$0xff]  ;;  %v348_v27 = vpack.c.bf16 %v31_v23, %v30_v22  ;;  %v126_v31 = vld [vmem:[%s581_s3 + $0x40] sm:$0xff] }
   0xc   :  { %343 = vmatpush3.bf16.msra.mxu0 %v342_v14  ;;  %v32_v28 = vld [vmem:[%s579_s1 + $0x50] sm:$0xff]  ;;  %v33_v29 = vld [vmem:[%s579_s1 + $0x58] sm:$0xff]  ;;  %v369_v30 = vpack.c.bf16 %v125_v26, %v124_v25  ;;  %v127_v32 = vld [vmem:[%s581_s3 + $0x48] sm:$0xff] }
   0xd   :  { %344 = vmatprep.subr.bf16.mxu0 %v411_v3  ;;  %v351_v33 = vpack.c.bf16 %v33_v29, %v32_v28  ;;  %v34_v34 = vld [vmem:[%s579_s1 + $0x60] sm:$0xff]  ;;  %v35_v35 = vld [vmem:[%s579_s1 + $0x68] sm:$0xff]  ;;  %v372_v36 = vpack.c.bf16 %v127_v32, %v126_v31  ;;  %v128_v37 = vld [vmem:[%s581_s3 + $0x50] sm:$0xff] }
   0xe   :  { %367 = vmatpush3.bf16.msra.mxu1 %v366_v24  ;;  %v129_v38 = vld [vmem:[%s581_s3 + $0x58] sm:$0xff]  ;;  %v354_v39 = vpack.c.bf16 %v35_v35, %v34_v34  ;;  %v36_v40 = vld [vmem:[%s579_s1 + $0x70] sm:$0xff]  ;;  %v130_v43 = vld [vmem:[%s581_s3 + $0x60] sm:$0xff] }
   0xf   :  { %368 = vmatprep.subr.bf16.mxu1 %v411_v3  ;;  %v37_v41 = vld [vmem:[%s579_s1 + $0x78] sm:$0xff]  ;;  %v375_v42 = vpack.c.bf16 %v129_v38, %v128_v37  ;;  %v131_v44 = vld [vmem:[%s581_s3 + $0x68] sm:$0xff]  ;;  %v21_v47 = vld [vmem:[%s578_s0] sm:$0xff] }
  0x10   :  { %346 = vmatpush3.bf16.msra.mxu0 %v345_v21  ;;  %v357_v45 = vpack.c.bf16 %v37_v41, %v36_v40  ;;  %v378_v46 = vpack.c.bf16 %v131_v44, %v130_v43  ;;  %v132_v48 = vld [vmem:[%s581_s3 + $0x70] sm:$0xff]  ;;  %v133_v49 = vld [vmem:[%s581_s3 + $0x78] sm:$0xff]  ;;  %v229_v51 = vld [vmem:[%s580_s2] ss:$0 sm:$0xff]  ;;  %s414_s3 = smov [#allocation2]  }
  0x11   :  { %347 = vmatprep.subr.bf16.mxu0 %v411_v3  ;;  %v381_v50 = vpack.c.bf16 %v133_v49, %v132_v48  ;;  %v230_v57 = vld [vmem:[%s582_s4] ss:$0 sm:$0xff]  ;;  %s221_s11 = sshll.u32 %s414_s3, 4  ;;  %s222_s11 = int_to_ptr.vmem [resolvable:$true] %s221_s11 }
  0x12   :  { %370 = vmatpush3.bf16.msra.mxu1 %v369_v30  ;;  %s387_s2 = scalar_lea.vmem %s222_s11, 128  ;;  %p392_p1 = scmp.lt.s32.totalorder %s222_s11, %s222_s11 }
  0x13   :  { %371 = vmatprep.subr.bf16.mxu1 %v411_v3  ;;  %p388_p0 = scmp.ne.s32.totalorder %s222_s11, %s387_s2  ;;  %p393_p2 = scmp.lt.s32.totalorder %s387_s2, %s387_s2 }
  0x14   :  { %349 = vmatpush3.bf16.msra.mxu0 %v348_v27 }
  0x15   :  { %350 = vmatprep.subr.bf16.mxu0 %v411_v3  ;;  %p394_p3 = por %p393_p2, %p392_p1 }
  0x16   :  { %373 = vmatpush3.bf16.msra.mxu1 %v372_v36 }
  0x17   :  { %374 = vmatprep.subr.bf16.mxu1 %v411_v3  ;;  %p395_p4 = pnand %p394_p3, %p388_p0 }
  0x18   :  { %352 = vmatpush3.bf16.msra.mxu0 %v351_v33 }
  0x19   :  { %353 = vmatprep.subr.bf16.mxu0 %v411_v3 }
  0x1a   :  { %376 = vmatpush3.bf16.msra.mxu1 %v375_v42 }
  0x1b   :  { %377 = vmatprep.subr.bf16.mxu1 %v411_v3 }
  0x1c   :  { %355 = vmatpush3.bf16.msra.mxu0 %v354_v39 }
  0x1d   :  { %356 = vmatprep.subr.bf16.mxu0 %v411_v3 }
  0x1e   :  { %379 = vmatpush3.bf16.msra.mxu1 %v378_v46 }
  0x1f   :  { %380 = vmatprep.subr.bf16.mxu1 %v411_v3 }
  0x20   :  { %358 = vmatpush3.bf16.msra.mxu0 %v357_v45 }
  0x22   :  { %382 = vmatpush3.bf16.msra.mxu1 %v381_v50 }
  0x23   :  { %298 = vmatmul.mubr.f32.vlgmr.msra.gmra.mrb[0].mxu0 %v21_v47 }
  0xf6   :  { %v111_v52 = vpop.f32.mrb[0].mxu0 }
  0xf7   :  { %v112_v53 = vadd.f32 %v229_v51, %v111_v52  ;;  %v299_v54 = vpop.f32.mrb[1].mxu0 }
  0xf9   :  { %v116_v55 = vmul.f32 0.2, %v112_v53  ;;  %vm115_vm1 = vcmp.ge.f32.partialorder %v112_v53, 0.0 }
  0xfb   :  { %v117_v56 = vsel %vm115_vm1, %v112_v53, %v116_v55 }
  0xfc   :  { %333 = vmatmul.mubr.f32.vlgmr.msra.gmra.mrb[0].mxu1 %v117_v56 }
 0x1cf   :  { %v207_v58 = vpop.f32.mrb[0].mxu1 }
 0x1d0   :  { %v208_v59 = vadd.f32 %v230_v57, %v207_v58  ;;  %v334_v60 = vpop.f32.mrb[1].mxu1 }
 0x1d2   :  { %v212_v61 = vmul.f32 0.2, %v208_v59  ;;  %vm211_vm2 = vcmp.ge.f32.partialorder %v208_v59, 0.0 }
 0x1d4   :  { %v213_v62 = vsel %vm211_vm2, %v208_v59, %v212_v61 }
 0x1d5   :  { %214 = vst [vmem:[#allocation2] sm:$0xff] %v213_v62 }
 0x1d6   :  { %398 = shalt.err (!%p395_p4)
}
 0x1d7   :  { %s399_s4 = scalar_lea.hbm %s583_s5, 128 }
 0x1d8   :  { %p400_p5 = scmp.ne.s32.totalorder %s583_s5, %s399_s4  ;;  %p403_p6 = scmp.lt.u32.totalorder %s399_s4, %s583_s5 }
 0x1da   :  { %p405_p7 = pnand %p403_p6, %p400_p5 }
 0x1dc   :  { %408 = shalt.err (!%p405_p7)
}
 0x1dd   :  { %224 = dma.vmem_to_hbm [thread:$0]  %s222_s11, 128, %s583_s5, [#allocation3]  }
 0x1de   :  { %409 = dma.done.wait [#allocation3], 128  }
 0x1df   :  { %410 = vsyncadd [#allocation3], 4294967168 }
 0x1e0   :  { %228 = vsyncpa [#allocation3], 1 }

</bundles_post_ra>
